<compile_context>
chip_gen: v5e
topology: v5e:2x2
jax: 0.10.0
libtpu: 0.0.40
codegen_flags: <defaults>
</compile_context>

<pallas_src>
import functools

import jax
import jax.numpy as jnp
from jax.experimental import pallas as pl
from jax.experimental.pallas import tpu as pltpu

LEAKY_RELU_NEG_SLOPE = 0.01  # torch.nn.LeakyReLU default


def _round_up(x: int, m: int) -> int:
    return ((x + m - 1) // m) * m


def _mlp_kernel(num_hidden_layers, *refs):
    """Fused MLP for one batch tile: all linears + LeakyReLUs computed in VMEM.

    refs = (x_ref, w0_ref, b0_ref, w1_ref, b1_ref, ..., o_ref)
    weights are [in_pad, out_pad]; biases are [1, out_pad] in f32.
    """
    x_ref = refs[0]
    o_ref = refs[-1]
    param_refs = refs[1:-1]
    n_linear = len(param_refs) // 2

    h = x_ref[...]
    for i in range(n_linear):
        w = param_refs[2 * i][...]
        b = param_refs[2 * i + 1][...]  # already f32 (pre-cast in wrapper)
        # Feed the MXU in the weight's storage dtype when it is sub-f32 (bf16 path);
        # otherwise pass h through unchanged. Accumulation is always f32.
        lhs = h.astype(w.dtype) if (w.dtype != jnp.float32 and h.dtype != w.dtype) else h
        h = jnp.dot(lhs, w, preferred_element_type=jnp.float32) + b
        if i < num_hidden_layers:
            # hidden nonlinearity: LeakyReLU (pure VPU work, hides under MXU/DMA)
            h = jnp.where(h >= 0, h, LEAKY_RELU_NEG_SLOPE * h)
    o_ref[...] = h.astype(o_ref.dtype)


def simple_mlp_forward(x, weights_t, biases, num_hidden_layers, *,
                       block_batch=256, weight_dtype=None):
    """x: [B, input_size]; weights_t[i]: [in, out]; biases[i]: [1, out] or [out]."""
    batch, in_size = x.shape
    n_linear = len(weights_t)
    out_size = weights_t[-1].shape[1]

    if weight_dtype is not None:
        weights_t = [w.astype(weight_dtype) for w in weights_t]

    # Lane-dense padded widths (multiples of 128) for every layer boundary.
    dims = [in_size] + [int(w.shape[1]) for w in weights_t]
    pdims = [_round_up(d, 128) for d in dims]

    # Batch tile: large enough to pipeline, but no bigger than the (padded) batch.
    tb = min(int(block_batch), _round_up(batch, 8))
    batch_pad = _round_up(batch, tb)
    grid = (batch_pad // tb,)

    # Zero-pad x (exact: padded columns multiply zero weight rows).
    xp = jnp.zeros((batch_pad, pdims[0]), x.dtype).at[:batch, :in_size].set(x)

    args = [xp]
    in_specs = [pl.BlockSpec((tb, pdims[0]), lambda i: (i, 0))]
    for li in range(n_linear):
        w = weights_t[li]
        b = jnp.reshape(biases[li], (1, -1)).astype(jnp.float32)
        pin, pout = pdims[li], pdims[li + 1]
        wp = jnp.zeros((pin, pout), w.dtype).at[:w.shape[0], :w.shape[1]].set(w)
        bp = jnp.zeros((1, pout), jnp.float32).at[:, :b.shape[1]].set(b)
        args.append(wp)
        args.append(bp)
        # Constant index_map: weights/biases resident in VMEM across grid steps.
        in_specs.append(pl.BlockSpec((pin, pout), lambda i: (0, 0)))
        in_specs.append(pl.BlockSpec((1, pout), lambda i: (0, 0)))

    out_specs = pl.BlockSpec((tb, pdims[-1]), lambda i: (i, 0))
    out_shape = jax.ShapeDtypeStruct((batch_pad, pdims[-1]), x.dtype)

    # VMEM budget: resident params (+ double-buffer headroom), 2x-buffered x/out
    # tiles, plus generous f32 activation scratch. Cap at 64 MiB for v7x portability.
    itemsize = x.dtype.itemsize
    param_bytes = sum(int(a.size) * a.dtype.itemsize for a in args[1:])
    io_bytes = 2 * tb * pdims[0] * itemsize + 2 * tb * pdims[-1] * itemsize
    act_bytes = 4 * tb * max(pdims) * 4
    vmem_limit = int(min(max(2 * param_bytes + io_bytes + act_bytes + (2 << 20),
                             16 << 20), 64 << 20))
    # TODO(synk): if resident weights ever exceed the 64 MiB v7x budget, switch the
    # offending layer to an N/K-tiled streaming grid with a VMEM accumulator.

    # Scheduler hint: total MXU flops + HBM traffic for the fused call.
    flops = 2 * batch_pad * sum(pdims[i] * pdims[i + 1] for i in range(n_linear))
    bytes_accessed = (xp.size * itemsize + param_bytes
                      + batch_pad * pdims[-1] * itemsize)
    cost = pl.CostEstimate(flops=flops, transcendentals=0,
                           bytes_accessed=bytes_accessed)

    kernel = functools.partial(_mlp_kernel, num_hidden_layers)
    out = pl.pallas_call(
        kernel,
        out_shape=out_shape,
        grid=grid,
        in_specs=in_specs,
        out_specs=out_specs,
        compiler_params=pltpu.CompilerParams(
            dimension_semantics=("parallel",),
            vmem_limit_bytes=vmem_limit,
        ),
        cost_estimate=cost,
    )(*args)
    return out[:batch, :out_size]


def init_simple_mlp_params(key, input_size, num_layers, num_neurons, output_size):
    """Deterministic init matching torch.nn.Linear's U(-1/sqrt(fan_in), 1/sqrt(fan_in))."""
    hidden_sizes = [num_neurons] * num_layers
    in_sizes = [input_size] + hidden_sizes[:-1]
    layer_dims = list(zip(in_sizes, hidden_sizes))
    if output_size is not None:
        last_in = hidden_sizes[-1] if hidden_sizes else input_size
        layer_dims.append((last_in, output_size))

    weights_t, biases = [], []
    for (n_in, n_out) in layer_dims:
        key, kw, kb = jax.random.split(key, 3)
        bound = 1.0 / jnp.sqrt(jnp.float32(n_in))
        # PyTorch stores W as [out, in]; we pre-transpose to [in, out] for the kernel.
        w = jax.random.uniform(kw, (n_out, n_in), jnp.float32, -bound, bound)
        b = jax.random.uniform(kb, (n_out,), jnp.float32, -bound, bound)
        weights_t.append(jnp.transpose(w))
        biases.append(b.reshape(1, n_out))
    return weights_t, biases


def simple_mlp_reference(x, weights_t, biases, num_hidden_layers):
    h = x.astype(jnp.float32)
    n_linear = len(weights_t)
    for i in range(n_linear):
        h = h @ weights_t[i].astype(jnp.float32) + biases[i].astype(jnp.float32)
        if i < num_hidden_layers:
            h = jnp.where(h >= 0, h, LEAKY_RELU_NEG_SLOPE * h)
    return h.astype(x.dtype)


if __name__ == "__main__":
    # Small shapes consistent with the module's forward ([B, input_size]).
    batch = 4
    input_size = 16
    num_layers = 2
    num_neurons = 32
    output_size = 8

    key = jax.random.PRNGKey(0)
    key, kx = jax.random.split(key)
    x = jax.random.normal(kx, (batch, input_size), jnp.float32)

    weights_t, biases = init_simple_mlp_params(
        key, input_size, num_layers, num_neurons, output_size
    )

    out = simple_mlp_forward(x, weights_t, biases, num_hidden_layers=num_layers)
    out = jax.block_until_ready(out)

    ref = simple_mlp_reference(x, weights_t, biases, num_hidden_layers=num_layers)
    assert out.shape == (batch, output_size), out.shape
    assert jnp.allclose(out, ref, atol=1e-5, rtol=1e-5), "mismatch vs reference"

    print("KERNEL_OK")
</pallas_src>

<mosaic_0001>
module attributes {stable_mosaic.version = 11 : i64} {
  func.func @_mlp_kernel(%arg0: i32, %arg1: memref<8x128xf32, #tpu.memory_space<vmem>>, %arg2: memref<128x128xf32, #tpu.memory_space<vmem>>, %arg3: memref<1x128xf32, #tpu.memory_space<vmem>>, %arg4: memref<128x128xf32, #tpu.memory_space<vmem>>, %arg5: memref<1x128xf32, #tpu.memory_space<vmem>>, %arg6: memref<128x128xf32, #tpu.memory_space<vmem>>, %arg7: memref<1x128xf32, #tpu.memory_space<vmem>>, %arg8: memref<8x128xf32, #tpu.memory_space<vmem>>) attributes {dimension_semantics = [#tpu.dimension_semantics<parallel>], iteration_bounds = array<i64: 1>, scalar_prefetch = 0 : i64, scratch_operands = 0 : i64, tpu.core_type = #tpu.core_type<tc>, window_params = [{transform_indices = @transform_0, window_bounds = array<i64: 8, 128>}, {pipeline_mode = #tpu.pipeline_mode<synchronous>, transform_indices = @transform_1, window_bounds = array<i64: 128, 128>}, {pipeline_mode = #tpu.pipeline_mode<synchronous>, transform_indices = @transform_2, window_bounds = array<i64: 1, 128>}, {pipeline_mode = #tpu.pipeline_mode<synchronous>, transform_indices = @transform_3, window_bounds = array<i64: 128, 128>}, {pipeline_mode = #tpu.pipeline_mode<synchronous>, transform_indices = @transform_4, window_bounds = array<i64: 1, 128>}, {pipeline_mode = #tpu.pipeline_mode<synchronous>, transform_indices = @transform_5, window_bounds = array<i64: 128, 128>}, {pipeline_mode = #tpu.pipeline_mode<synchronous>, transform_indices = @transform_6, window_bounds = array<i64: 1, 128>}, {transform_indices = @transform_7, window_bounds = array<i64: 8, 128>}]} {
    %c0 = arith.constant 0 : index
    %c0_0 = arith.constant 0 : index
    %0 = vector.load %arg1[%c0, %c0_0] : memref<8x128xf32, #tpu.memory_space<vmem>>, vector<8x128xf32>
    %c0_1 = arith.constant 0 : index
    %c0_2 = arith.constant 0 : index
    %1 = vector.load %arg2[%c0_1, %c0_2] : memref<128x128xf32, #tpu.memory_space<vmem>>, vector<128x128xf32>
    %c0_3 = arith.constant 0 : index
    %c0_4 = arith.constant 0 : index
    %2 = vector.load %arg3[%c0_3, %c0_4] : memref<1x128xf32, #tpu.memory_space<vmem>>, vector<1x128xf32>
    %cst = arith.constant dense<0.000000e+00> : vector<8x128xf32>
    %3 = tpu.matmul %0, %1, %cst {dimension_numbers = #tpu.dot_dimension_numbers<[1], [0], [0], [1], [0, 0, 1, 1], [], []>} : vector<8x128xf32>, vector<128x128xf32>, vector<8x128xf32> -> vector<8x128xf32>
    %4 = vector.broadcast %2 : vector<1x128xf32> to vector<8x128xf32>
    %5 = arith.addf %3, %4 : vector<8x128xf32>
    %cst_5 = arith.constant 0.000000e+00 : f32
    %6 = vector.broadcast %cst_5 : f32 to vector<8x128xf32>
    %7 = arith.cmpf oge, %5, %6 : vector<8x128xf32>
    %cst_6 = arith.constant 0.00999999977 : f32
    %8 = vector.broadcast %cst_6 : f32 to vector<8x128xf32>
    %9 = arith.mulf %8, %5 : vector<8x128xf32>
    %10 = arith.select %7, %5, %9 : vector<8x128xi1>, vector<8x128xf32>
    %c0_7 = arith.constant 0 : index
    %c0_8 = arith.constant 0 : index
    %11 = vector.load %arg4[%c0_7, %c0_8] : memref<128x128xf32, #tpu.memory_space<vmem>>, vector<128x128xf32>
    %c0_9 = arith.constant 0 : index
    %c0_10 = arith.constant 0 : index
    %12 = vector.load %arg5[%c0_9, %c0_10] : memref<1x128xf32, #tpu.memory_space<vmem>>, vector<1x128xf32>
    %cst_11 = arith.constant dense<0.000000e+00> : vector<8x128xf32>
    %13 = tpu.matmul %10, %11, %cst_11 {dimension_numbers = #tpu.dot_dimension_numbers<[1], [0], [0], [1], [0, 0, 1, 1], [], []>} : vector<8x128xf32>, vector<128x128xf32>, vector<8x128xf32> -> vector<8x128xf32>
    %14 = vector.broadcast %12 : vector<1x128xf32> to vector<8x128xf32>
    %15 = arith.addf %13, %14 : vector<8x128xf32>
    %cst_12 = arith.constant 0.000000e+00 : f32
    %16 = vector.broadcast %cst_12 : f32 to vector<8x128xf32>
    %17 = arith.cmpf oge, %15, %16 : vector<8x128xf32>
    %cst_13 = arith.constant 0.00999999977 : f32
    %18 = vector.broadcast %cst_13 : f32 to vector<8x128xf32>
    %19 = arith.mulf %18, %15 : vector<8x128xf32>
    %20 = arith.select %17, %15, %19 : vector<8x128xi1>, vector<8x128xf32>
    %c0_14 = arith.constant 0 : index
    %c0_15 = arith.constant 0 : index
    %21 = vector.load %arg6[%c0_14, %c0_15] : memref<128x128xf32, #tpu.memory_space<vmem>>, vector<128x128xf32>
    %c0_16 = arith.constant 0 : index
    %c0_17 = arith.constant 0 : index
    %22 = vector.load %arg7[%c0_16, %c0_17] : memref<1x128xf32, #tpu.memory_space<vmem>>, vector<1x128xf32>
    %cst_18 = arith.constant dense<0.000000e+00> : vector<8x128xf32>
    %23 = tpu.matmul %20, %21, %cst_18 {dimension_numbers = #tpu.dot_dimension_numbers<[1], [0], [0], [1], [0, 0, 1, 1], [], []>} : vector<8x128xf32>, vector<128x128xf32>, vector<8x128xf32> -> vector<8x128xf32>
    %24 = vector.broadcast %22 : vector<1x128xf32> to vector<8x128xf32>
    %25 = arith.addf %23, %24 : vector<8x128xf32>
    %c0_19 = arith.constant 0 : index
    %c0_20 = arith.constant 0 : index
    %26 = vector.load %arg8[%c0_19, %c0_20] : memref<8x128xf32, #tpu.memory_space<vmem>>, vector<8x128xf32>
    tpu.vector_store %arg8[%c0_19, %c0_20], %25 {strides = array<i32>} : memref<8x128xf32, #tpu.memory_space<vmem>>, vector<8x128xf32>,
    return
  }
  func.func @transform_0(%arg0: i32) -> (i32, i32) {
    %c0_i32 = arith.constant 0 : i32
    %c0_i32_0 = arith.constant 0 : i32
    return %arg0, %c0_i32 : i32, i32
  }
  func.func @transform_1(%arg0: i32) -> (i32, i32) {
    %c0_i32 = arith.constant 0 : i32
    %c0_i32_0 = arith.constant 0 : i32
    %c0_i32_1 = arith.constant 0 : i32
    return %c0_i32, %c0_i32_0 : i32, i32
  }
  func.func @transform_2(%arg0: i32) -> (i32, i32) {
    %c0_i32 = arith.constant 0 : i32
    %c0_i32_0 = arith.constant 0 : i32
    %c0_i32_1 = arith.constant 0 : i32
    return %c0_i32, %c0_i32_0 : i32, i32
  }
  func.func @transform_3(%arg0: i32) -> (i32, i32) {
    %c0_i32 = arith.constant 0 : i32
    %c0_i32_0 = arith.constant 0 : i32
    %c0_i32_1 = arith.constant 0 : i32
    return %c0_i32, %c0_i32_0 : i32, i32
  }
  func.func @transform_4(%arg0: i32) -> (i32, i32) {
    %c0_i32 = arith.constant 0 : i32
    %c0_i32_0 = arith.constant 0 : i32
    %c0_i32_1 = arith.constant 0 : i32
    return %c0_i32, %c0_i32_0 : i32, i32
  }
  func.func @transform_5(%arg0: i32) -> (i32, i32) {
    %c0_i32 = arith.constant 0 : i32
    %c0_i32_0 = arith.constant 0 : i32
    %c0_i32_1 = arith.constant 0 : i32
    return %c0_i32, %c0_i32_0 : i32, i32
  }
  func.func @transform_6(%arg0: i32) -> (i32, i32) {
    %c0_i32 = arith.constant 0 : i32
    %c0_i32_0 = arith.constant 0 : i32
    %c0_i32_1 = arith.constant 0 : i32
    return %c0_i32, %c0_i32_0 : i32, i32
  }
  func.func @transform_7(%arg0: i32) -> (i32, i32) {
    %c0_i32 = arith.constant 0 : i32
    %c0_i32_0 = arith.constant 0 : i32
    return %arg0, %c0_i32 : i32, i32
  }
}

</mosaic_0001>

<bundles_post_ra>
// kernel: tpu_custom_call.1
= control target key start
LH: loop header
LB: loop body
LE: loop exit
PB: predicated region body
PF: predicated region fallthrough
CT: control target
= control target key end

     0   :  { %12 = vsyncpa [#allocation3], 0  ;;  %s444_s0 = inlined_call_operand.hbm [shape: f32[8,128], index: 0, kind: input, shape index: {}]   ;;  %s445_s1 = inlined_call_operand.hbm [shape: f32[128,128], index: 1, kind: input, shape index: {}]   ;;  %s446_s2 = inlined_call_operand.vmem [shape: f32[1,128], index: 2, kind: input, shape index: {}]   ;;  %s447_s3 = inlined_call_operand.hbm [shape: f32[128,128], index: 3, kind: input, shape index: {}]   ;;  %s448_s4 = inlined_call_operand.vmem [shape: f32[1,128], index: 4, kind: input, shape index: {}]   ;;  %s449_s5 = inlined_call_operand.hbm [shape: f32[128,128], index: 5, kind: input, shape index: {}]   ;;  %s450_s6 = inlined_call_operand.vmem [shape: f32[1,128], index: 6, kind: input, shape index: {}]   ;;  %s451_s7 = inlined_call_operand.hbm [shape: f32[8,128], index: 7, kind: output, shape index: {}]  }
   0x1   :  { %13 = vsyncpa [#allocation6], 0 }
   0x2   :  { %14 = vsyncpa [#allocation9], 0  ;;  %s31_s26 = sshll.u32 %s445_s1, 4  ;;  %s32_s26 = int_to_ptr.hbm [resolvable:$true] %s31_s26 }
   0x3   :  { %15 = vsyncpa [#allocation4], 0  ;;  %s373_s27 = smov [#allocation5]   ;;  %s21_s8 = sshll.u32 %s444_s0, 4  ;;  %s22_s8 = int_to_ptr.hbm [resolvable:$true] %s21_s8 }
   0x4   :  { %s33_s28 = sshll.u32 %s373_s27, 4  ;;  %s374_s9 = smov 128   ;;  %s34_s28 = int_to_ptr.vmem [resolvable:$true] %s33_s28 }
   0x5   :  { %s375_s10 = smov 8   ;;  %s376_s11 = smov [#allocation2]  }
   0x6   :  { %39 = dma.hbm_to_vmem [thread:$0]  %s32_s26, 2048, %s34_s28, [#allocation6], %s374_s9, %s374_s9, %s375_s10  }
   0x7   :  { %s23_s12 = sshll.u32 %s376_s11, 4  ;;  %s46_s15 = sshll.u32 %s447_s3, 4  ;;  %s24_s12 = int_to_ptr.vmem [resolvable:$true] %s23_s12  ;;  %s47_s15 = int_to_ptr.hbm [resolvable:$true] %s46_s15 }
   0x8   :  { %26 = dma.hbm_to_vmem [thread:$0]  %s22_s8, 128, %s24_s12, [#allocation3]  }
   0x9   :  { %s61_s17 = sshll.u32 %s449_s5, 4  ;;  %s377_s18 = smov [#allocation7]   ;;  %s62_s17 = int_to_ptr.hbm [resolvable:$true] %s61_s17 }
   0xa   :  { %s48_s19 = sshll.u32 %s377_s18, 4  ;;  %s378_s0 = smov [#allocation8]   ;;  %s49_s19 = int_to_ptr.vmem [resolvable:$true] %s48_s19 }
   0xb   :  { %54 = dma.hbm_to_vmem [thread:$0]  %s47_s15, 2048, %s49_s19, [#allocation6], %s374_s9, %s374_s9, %s375_s10  }
   0xc   :  { %s63_s20 = sshll.u32 %s378_s0, 4  ;;  %s64_s20 = int_to_ptr.vmem [resolvable:$true] %s63_s20 }
   0xd   :  { %69 = dma.hbm_to_vmem [thread:$0]  %s62_s17, 2048, %s64_s20, [#allocation9], %s374_s9, %s374_s9, %s375_s10  }
   0xe   :  { %365 = dma.done.wait [#allocation3], 128  }
   0xf   :  { %366 = vsyncadd [#allocation3], 4294967168 }
  0x10   :  { %367 = dma.done.wait [#allocation6], 4096  }
  0x11   :  { %368 = vsyncadd [#allocation6], 4294963200 }
  0x12   :  { %369 = dma.done.wait [#allocation9], 2048  }
  0x13   :  { %370 = vsyncadd [#allocation9], 4294965248  ;;  %v104_v0 = vld [vmem:[#allocation5 + $0x78] sm:$0xff]  ;;  %v103_v1 = vld [vmem:[#allocation5 + $0x70] sm:$0xff]  ;;  %s379_s24 = smov [#allocation10]   ;;  %s223_s28 = sshll.u32 %s451_s7, 4  ;;  %s224_s28 = int_to_ptr.hbm [resolvable:$true] %s223_s28 }
  0x14   :  { %109 = vmatpush.msra.mxu0 %v104_v0  ;;  %v102_v2 = vld [vmem:[#allocation5 + $0x68] sm:$0xff]  ;;  %v101_v3 = vld [vmem:[#allocation5 + $0x60] sm:$0xff]  ;;  %v147_v4 = vld [vmem:[#allocation7 + $0x78] sm:$0xff]  ;;  %s221_s25 = sshll.u32 %s379_s24, 4  ;;  %s222_s25 = int_to_ptr.vmem [resolvable:$true] %s221_s25 }
  0x15   :  { %v100_v5 = vld [vmem:[#allocation5 + $0x58] sm:$0xff]  ;;  %152 = vmatpush.msra.mxu1 %v147_v4  ;;  %v146_v6 = vld [vmem:[#allocation7 + $0x70] sm:$0xff]  ;;  %v145_v7 = vld [vmem:[#allocation7 + $0x68] sm:$0xff] }
  0x16   :  { %110 = vmatpush.msra.mxu0 %v103_v1  ;;  %v99_v8 = vld [vmem:[#allocation5 + $0x50] sm:$0xff]  ;;  %v144_v9 = vld [vmem:[#allocation7 + $0x60] sm:$0xff]  ;;  %v98_v10 = vld [vmem:[#allocation5 + $0x48] sm:$0xff] }
  0x17   :  { %153 = vmatpush.msra.mxu1 %v146_v6  ;;  %v143_v11 = vld [vmem:[#allocation7 + $0x58] sm:$0xff]  ;;  %v97_v12 = vld [vmem:[#allocation5 + $0x40] sm:$0xff]  ;;  %v142_v13 = vld [vmem:[#allocation7 + $0x50] sm:$0xff] }
  0x18   :  { %111 = vmatpush.msra.mxu0 %v102_v2  ;;  %v96_v14 = vld [vmem:[#allocation5 + $0x38] sm:$0xff]  ;;  %v141_v15 = vld [vmem:[#allocation7 + $0x48] sm:$0xff]  ;;  %v95_v16 = vld [vmem:[#allocation5 + $0x30] sm:$0xff] }
  0x19   :  { %154 = vmatpush.msra.mxu1 %v145_v7  ;;  %v140_v17 = vld [vmem:[#allocation7 + $0x40] sm:$0xff]  ;;  %v94_v18 = vld [vmem:[#allocation5 + $0x28] sm:$0xff]  ;;  %v139_v19 = vld [vmem:[#allocation7 + $0x38] sm:$0xff] }
  0x1a   :  { %112 = vmatpush.msra.mxu0 %v101_v3  ;;  %v93_v20 = vld [vmem:[#allocation5 + $0x20] sm:$0xff]  ;;  %v138_v21 = vld [vmem:[#allocation7 + $0x30] sm:$0xff]  ;;  %v92_v22 = vld [vmem:[#allocation5 + $0x18] sm:$0xff] }
  0x1b   :  { %155 = vmatpush.msra.mxu1 %v144_v9  ;;  %v137_v23 = vld [vmem:[#allocation7 + $0x28] sm:$0xff]  ;;  %v91_v24 = vld [vmem:[#allocation5 + $0x10] sm:$0xff]  ;;  %v136_v25 = vld [vmem:[#allocation7 + $0x20] sm:$0xff] }
  0x1c   :  { %113 = vmatpush.msra.mxu0 %v100_v5  ;;  %v90_v26 = vld [vmem:[#allocation5 + $0x8] sm:$0xff]  ;;  %v135_v27 = vld [vmem:[#allocation7 + $0x18] sm:$0xff]  ;;  %v89_v28 = vld [vmem:[#allocation5] sm:$0xff] }
  0x1d   :  { %156 = vmatpush.msra.mxu1 %v143_v11  ;;  %v88_v29 = vld [vmem:[#allocation2] sm:$0xff]  ;;  %v134_v30 = vld [vmem:[#allocation7 + $0x10] sm:$0xff]  ;;  %v133_v31 = vld [vmem:[#allocation7 + $0x8] sm:$0xff] }
  0x1e   :  { %114 = vmatpush.msra.mxu0 %v99_v8  ;;  %v132_v32 = vld [vmem:[#allocation7] sm:$0xff]  ;;  %v190_v33 = vld [vmem:[#allocation8 + $0x78] sm:$0xff]  ;;  %v189_v34 = vld [vmem:[#allocation8 + $0x70] sm:$0xff] }
  0x1f   :  { %157 = vmatpush.msra.mxu1 %v142_v13  ;;  %195 = vmatpush.msra.mxu2 %v190_v33  ;;  %v188_v35 = vld [vmem:[#allocation8 + $0x68] sm:$0xff]  ;;  %v187_v36 = vld [vmem:[#allocation8 + $0x60] sm:$0xff]  ;;  %v186_v37 = vld [vmem:[#allocation8 + $0x58] sm:$0xff] }
  0x20   :  { %115 = vmatpush.msra.mxu0 %v98_v10  ;;  %v185_v38 = vld [vmem:[#allocation8 + $0x50] sm:$0xff]  ;;  %v184_v39 = vld [vmem:[#allocation8 + $0x48] sm:$0xff]  ;;  %v183_v40 = vld [vmem:[#allocation8 + $0x40] sm:$0xff] }
  0x21   :  { %158 = vmatpush.msra.mxu1 %v141_v15  ;;  %196 = vmatpush.msra.mxu2 %v189_v34  ;;  %v182_v41 = vld [vmem:[#allocation8 + $0x38] sm:$0xff]  ;;  %v181_v42 = vld [vmem:[#allocation8 + $0x30] sm:$0xff]  ;;  %v180_v43 = vld [vmem:[#allocation8 + $0x28] sm:$0xff] }
  0x22   :  { %116 = vmatpush.msra.mxu0 %v97_v12  ;;  %v179_v44 = vld [vmem:[#allocation8 + $0x20] sm:$0xff]  ;;  %v178_v45 = vld [vmem:[#allocation8 + $0x18] sm:$0xff]  ;;  %v177_v51 = vld [vmem:[#allocation8 + $0x10] sm:$0xff] }
  0x23   :  { %159 = vmatpush.msra.mxu1 %v140_v17  ;;  %197 = vmatpush.msra.mxu2 %v188_v35  ;;  %v242_v46 = vld [vmem:[%s446_s2] ss:$0 sm:$0xff]  ;;  %v176_v52 = vld [vmem:[#allocation8 + $0x8] sm:$0xff]  ;;  %v175_v53 = vld [vmem:[#allocation8] sm:$0xff] }
  0x24   :  { %117 = vmatpush.msra.mxu0 %v96_v14  ;;  %v243_v54 = vld [vmem:[%s448_s4] ss:$0 sm:$0xff] }
  0x25   :  { %160 = vmatpush.msra.mxu1 %v139_v19  ;;  %198 = vmatpush.msra.mxu2 %v187_v36  ;;  %v244_v59 = vld [vmem:[%s450_s6] ss:$0 sm:$0xff] }
  0x26   :  { %118 = vmatpush.msra.mxu0 %v95_v16 }
  0x27   :  { %161 = vmatpush.msra.mxu1 %v138_v21  ;;  %199 = vmatpush.msra.mxu2 %v186_v37 }
  0x28   :  { %119 = vmatpush.msra.mxu0 %v94_v18 }
  0x29   :  { %162 = vmatpush.msra.mxu1 %v137_v23  ;;  %200 = vmatpush.msra.mxu2 %v185_v38 }
  0x2a   :  { %120 = vmatpush.msra.mxu0 %v93_v20 }
  0x2b   :  { %163 = vmatpush.msra.mxu1 %v136_v25  ;;  %201 = vmatpush.msra.mxu2 %v184_v39 }
  0x2c   :  { %121 = vmatpush.msra.mxu0 %v92_v22 }
  0x2d   :  { %164 = vmatpush.msra.mxu1 %v135_v27  ;;  %202 = vmatpush.msra.mxu2 %v183_v40 }
  0x2e   :  { %122 = vmatpush.msra.mxu0 %v91_v24 }
  0x2f   :  { %165 = vmatpush.msra.mxu1 %v134_v30  ;;  %203 = vmatpush.msra.mxu2 %v182_v41 }
  0x30   :  { %123 = vmatpush.msra.mxu0 %v90_v26 }
  0x31   :  { %166 = vmatpush.msra.mxu1 %v133_v31  ;;  %204 = vmatpush.msra.mxu2 %v181_v42 }
  0x32   :  { %124 = vmatpush.msra.mxu0 %v89_v28 }
  0x33   :  { %125 = vmatmul.f32.vlgmr.msra.gmra.mxu0 %v88_v29  ;;  %167 = vmatpush.msra.mxu1 %v132_v32 }
  0x34   :  { %205 = vmatpush.msra.mxu2 %v180_v43 }
  0x36   :  { %206 = vmatpush.msra.mxu2 %v179_v44 }
  0x38   :  { %207 = vmatpush.msra.mxu2 %v178_v45 }
  0x3a   :  { %208 = vmatpush.msra.mxu2 %v177_v51 }
  0x3c   :  { %209 = vmatpush.msra.mxu2 %v176_v52 }
  0x3e   :  { %210 = vmatpush.msra.mxu2 %v175_v53 }
  0xb0   :  { %v126_v47 = vpop.f32.mrf.mxu0 }
  0xb1   :  { %v127_v48 = vadd.f32 %v242_v46, %v126_v47 }
  0xb3   :  { %vm129_vm0 = vcmp.ge.f32.partialorder %v127_v48, 0.0  ;;  %v130_v49 = vmul.f32 0.01, %v127_v48 }
  0xb5   :  { %v131_v50 = vsel %vm129_vm0, %v127_v48, %v130_v49 }
  0xb6   :  { %168 = vmatmul.f32.vlgmr.msra.gmra.mxu1 %v131_v50 }
 0x133   :  { %v169_v55 = vpop.f32.mrf.mxu1 }
 0x134   :  { %v170_v56 = vadd.f32 %v243_v54, %v169_v55 }
 0x136   :  { %vm172_vm1 = vcmp.ge.f32.partialorder %v170_v56, 0.0  ;;  %v173_v57 = vmul.f32 0.01, %v170_v56 }
 0x138   :  { %v174_v58 = vsel %vm172_vm1, %v170_v56, %v173_v57 }
 0x139   :  { %211 = vmatmul.f32.vlgmr.msra.gmra.mxu2 %v174_v58 }
 0x1bc   :  { %v212_v60 = vpop.f32.mrf.mxu2 }
 0x1bd   :  { %v213_v61 = vadd.f32 %v244_v59, %v212_v60 }
 0x1bf   :  { %215 = vst [vmem:[#allocation10] sm:$0xff] %v213_v61 }
 0x1c0   :  { %226 = dma.vmem_to_hbm [thread:$0]  %s222_s25, 128, %s224_s28, [#allocation4]  }
 0x1c1   :  { %371 = dma.done.wait [#allocation4], 128  }
 0x1c2   :  { %372 = vsyncadd [#allocation4], 4294967168 }
 0x1c3   :  { %231 = vsyncpa [#allocation3], 1 }
 0x1c4   :  { %232 = vsyncpa [#allocation6], 1 }
 0x1c5   :  { %233 = vsyncpa [#allocation9], 1 }
 0x1c6   :  { %234 = vsyncpa [#allocation4], 1 }

</bundles_post_ra>
